<compile_context>
chip_gen: v7x
topology: tpu7x:2x2x1
jax: 0.10.0
libtpu: 0.0.40
codegen_flags: <defaults>
</compile_context>

<pallas_src>
import functools

import jax
import jax.numpy as jnp
from jax.experimental import pallas as pl
from jax.experimental.pallas import tpu as pltpu

A_BOUND = (-1.0, 1.0)
HIDDEN = 64
_DEFAULT_BLOCK_B = 1024   # batch rows per grid step (multiple of 8); per-step
                          # footprint is tiny (S=… small), fits v7x's 64 MiB easily
_PALLAS_MIN_ROWS = 1024   # below this the per-call overhead beats the compute


def _round_up(x, m):
    return ((x + m - 1) // m) * m


def actor_kernel(s_ref, w1_ref, b1_ref, wh_ref, bh_ref, out_ref, *,
                 scale, bias, a_dim):
    """Fused MLP: x = tanh(fc1(s)); out = [scale*tanh(mu(x))-bias | softplus(sig(x))].

    The mu and sigma heads are fused into a single [HIDDEN, 2A] matmul; the two
    lane halves get tanh vs. softplus via a lane-index select (no slice/concat,
    everything stays in one lane group of the vreg).
    """
    # fc1: MXU matmul (operands may be bf16), f32 accumulate, f32 bias add.
    h = jnp.dot(s_ref[...], w1_ref[...],
                preferred_element_type=jnp.float32) + b1_ref[...]
    # Activations stay f32 (v5e VPU/EUP have no bf16 path).
    # TODO(synk): on v6e/v7x the tanh could run in bf16 for ~2x EUP throughput.
    x = jnp.tanh(h)

    # Fused heads: one [TB, HIDDEN] @ [HIDDEN, 2A] matmul, f32 accumulate.
    pre = jnp.dot(x.astype(wh_ref.dtype), wh_ref[...],
                  preferred_element_type=jnp.float32) + bh_ref[...]

    lane = jax.lax.broadcasted_iota(jnp.int32, pre.shape, dimension=1)
    mu_branch = scale * jnp.tanh(pre) - bias
    # numerically stable softplus (matches F.softplus, beta=1)
    sp_branch = jnp.maximum(pre, 0.0) + jnp.log1p(jnp.exp(-jnp.abs(pre)))
    out_ref[...] = jnp.where(lane < a_dim, mu_branch, sp_branch).astype(out_ref.dtype)


def _actor_pallas(s_mat, w1, b1, wheads, bheads, scale, bias, a_dim,
                  block_b=_DEFAULT_BLOCK_B):
    B, S = s_mat.shape
    two_a = wheads.shape[1]

    tb = min(block_b, max(8, _round_up(B, 8)))   # sublane-aligned batch tile
    grid = (pl.cdiv(B, tb),)

    kern = functools.partial(actor_kernel, scale=scale, bias=bias, a_dim=a_dim)

    return pl.pallas_call(
        kern,
        grid=grid,
        in_specs=[
            pl.BlockSpec((tb, S), lambda i: (i, 0)),           # batch-tiled input
            pl.BlockSpec((S, HIDDEN), lambda i: (0, 0)),       # VMEM-resident weights
            pl.BlockSpec((1, HIDDEN), lambda i: (0, 0)),
            pl.BlockSpec((HIDDEN, two_a), lambda i: (0, 0)),
            pl.BlockSpec((1, two_a), lambda i: (0, 0)),
        ],
        out_specs=pl.BlockSpec((tb, two_a), lambda i: (i, 0)),  # single [B, 2A] output
        out_shape=jax.ShapeDtypeStruct((B, two_a), jnp.float32),
        compiler_params=pltpu.CompilerParams(
            dimension_semantics=("parallel",)),                 # megacore on v7x
    )(s_mat, w1, b1, wheads, bheads)


def actor_forward(s, params, a_bound=A_BOUND, *, use_pallas=None,
                  matmul_dtype=jnp.bfloat16, block_b=_DEFAULT_BLOCK_B):
    """Mirrors Actor.forward.

    s: array; if ndim >= 2 the last two dims are flattened (like PyTorch's
       `s.flatten(s.ndim - 2, -1)`), remaining leading dims are batch.
    params: dict with w1 [S,64], b1 [1,64], wmu [64,A], bmu [1,A],
            wsg [64,A], bsg [1,A]  (fc2 exists in __init__ but is unused).
    returns: (mu, sigma) each of shape batch_dims + (A,)
    """
    low, high = a_bound
    scale = (high - low) / 2.0
    bias = scale - high

    s = jnp.asarray(s, jnp.float32)
    if s.ndim >= 2:                       # glue: flatten last two dims
        s = s.reshape(s.shape[:-2] + (s.shape[-2] * s.shape[-1],))
    lead = s.shape[:-1]
    S = s.shape[-1]
    s_mat = s.reshape((-1, S))
    B = s_mat.shape[0]
    a_dim = params["wmu"].shape[1]

    # fused head weights [HIDDEN, 2A] / bias [1, 2A]  (mu | sigma)
    wheads = jnp.concatenate([params["wmu"], params["wsg"]], axis=1)
    bheads = jnp.concatenate([params["bmu"], params["bsg"]], axis=1).astype(jnp.float32)

    if use_pallas is None:
        use_pallas = B >= _PALLAS_MIN_ROWS

    if use_pallas:
        # bf16 matmul operands halve HBM traffic / double MXU rate (v6e/v7x);
        # biases, accumulation and activations stay f32.
        md = matmul_dtype
        out = _actor_pallas(
            s_mat.astype(md), params["w1"].astype(md),
            params["b1"].astype(jnp.float32),
            wheads.astype(md), bheads,
            scale, bias, a_dim, block_b=block_b)
        mu = out[:, :a_dim]
        sigma = out[:, a_dim:]
    else:
        # tiny-batch fallback: custom-call overhead would exceed the compute
        x = jnp.tanh(s_mat @ params["w1"] + params["b1"])
        mu = scale * jnp.tanh(x @ params["wmu"] + params["bmu"]) - bias
        sigma = jax.nn.softplus(x @ params["wsg"] + params["bsg"])

    out_shape = lead + (a_dim,)
    return mu.reshape(out_shape), sigma.reshape(out_shape)


def _orthogonal(key, shape, gain=1.0):
    """Deterministic orthogonal init (matches nn.init.orthogonal_ semantics)."""
    rows, cols = shape
    n = max(rows, cols)
    a = jax.random.normal(key, (n, n), dtype=jnp.float32)
    q, r = jnp.linalg.qr(a)
    q = q * jnp.sign(jnp.diag(r))  # make decomposition unique
    return gain * q[:rows, :cols]


def init_actor_params(key, s_dim, a_dim):
    k1, k2, k3, k4, k5, k6 = jax.random.split(key, 6)
    # weights stored as [in, out] (transpose of PyTorch's [out, in])
    w1 = _orthogonal(k1, (HIDDEN, s_dim)).T      # fc1.weight^T
    wmu = _orthogonal(k2, (a_dim, HIDDEN)).T     # mu.weight^T
    wsg = _orthogonal(k3, (a_dim, HIDDEN)).T     # sigma.weight^T
    # biases: PyTorch default uniform(-1/sqrt(fan_in), 1/sqrt(fan_in))
    b1 = jax.random.uniform(k4, (1, HIDDEN), jnp.float32,
                            -1.0 / jnp.sqrt(s_dim), 1.0 / jnp.sqrt(s_dim))
    bmu = jax.random.uniform(k5, (1, a_dim), jnp.float32,
                             -1.0 / jnp.sqrt(HIDDEN), 1.0 / jnp.sqrt(HIDDEN))
    bsg = jax.random.uniform(k6, (1, a_dim), jnp.float32,
                             -1.0 / jnp.sqrt(HIDDEN), 1.0 / jnp.sqrt(HIDDEN))
    # TODO(synk): self.fc2 is initialized in __init__ but never used in forward,
    # so it is intentionally omitted.
    return dict(w1=w1, b1=b1, wmu=wmu, bmu=bmu, wsg=wsg, bsg=bsg)


def _reference(s, params, a_bound=A_BOUND):
    """Pure f32 XLA reference of Actor.forward."""
    low, high = a_bound
    scale = (high - low) / 2.0
    bias = scale - high
    s2 = s.reshape(s.shape[:-2] + (s.shape[-2] * s.shape[-1],))
    x = jnp.tanh(s2 @ params["w1"] + params["b1"][0])
    mu = scale * jnp.tanh(x @ params["wmu"] + params["bmu"][0]) - bias
    sigma = jax.nn.softplus(x @ params["wsg"] + params["bsg"][0])
    return mu, sigma


if __name__ == "__main__":
    key = jax.random.PRNGKey(0)
    k_obs, k_obs2, k_par = jax.random.split(key, 3)

    # small shapes: batch=2, observation per sample is [4, 8] -> s_dim = 32
    B, H, W = 2, 4, 8
    S_DIM = H * W
    A_DIM = 5  # M = 5 actions

    params = init_actor_params(k_par, S_DIM, A_DIM)

    # 1) tiny batch, forced through the Pallas path so the kernel is exercised
    obs = jax.random.normal(k_obs, (B, H, W), dtype=jnp.float32)
    mu, sigma = actor_forward(obs, params, use_pallas=True)
    jax.block_until_ready((mu, sigma))
    mu_ref, sigma_ref = _reference(obs, params)
    assert mu.shape == (B, A_DIM) and sigma.shape == (B, A_DIM)
    assert jnp.allclose(mu, mu_ref, rtol=5e-2, atol=5e-2)       # bf16 operands
    assert jnp.allclose(sigma, sigma_ref, rtol=5e-2, atol=5e-2)

    # 2) larger ragged batch exercising the batch grid (>1 step + padded tail)
    B2 = 300
    obs2 = jax.random.normal(k_obs2, (B2, H, W), dtype=jnp.float32)
    mu2, sigma2 = actor_forward(obs2, params, use_pallas=True, block_b=128)
    jax.block_until_ready((mu2, sigma2))
    mu2_ref, sigma2_ref = _reference(obs2, params)
    assert mu2.shape == (B2, A_DIM) and sigma2.shape == (B2, A_DIM)
    assert jnp.allclose(mu2, mu2_ref, rtol=5e-2, atol=5e-2)
    assert jnp.allclose(sigma2, sigma2_ref, rtol=5e-2, atol=5e-2)

    print("KERNEL_OK")
</pallas_src>

<mosaic_0001>
module attributes {stable_mosaic.version = 11 : i64} {
  func.func @actor_kernel(%arg0: i32, %arg1: memref<8x32xbf16, #tpu.memory_space<vmem>>, %arg2: memref<32x64xbf16, #tpu.memory_space<vmem>>, %arg3: memref<1x64xf32, #tpu.memory_space<vmem>>, %arg4: memref<64x10xbf16, #tpu.memory_space<vmem>>, %arg5: memref<1x10xf32, #tpu.memory_space<vmem>>, %arg6: memref<8x10xf32, #tpu.memory_space<vmem>>) attributes {dimension_semantics = [#tpu.dimension_semantics<parallel>], iteration_bounds = array<i64: 1>, scalar_prefetch = 0 : i64, scratch_operands = 0 : i64, tpu.core_type = #tpu.core_type<tc>, window_params = [{transform_indices = @transform_0, window_bounds = array<i64: 8, 32>}, {pipeline_mode = #tpu.pipeline_mode<synchronous>, transform_indices = @transform_1, window_bounds = array<i64: 32, 64>}, {pipeline_mode = #tpu.pipeline_mode<synchronous>, transform_indices = @transform_2, window_bounds = array<i64: 1, 64>}, {pipeline_mode = #tpu.pipeline_mode<synchronous>, transform_indices = @transform_3, window_bounds = array<i64: 64, 10>}, {pipeline_mode = #tpu.pipeline_mode<synchronous>, transform_indices = @transform_4, window_bounds = array<i64: 1, 10>}, {transform_indices = @transform_5, window_bounds = array<i64: 8, 10>}]} {
    %c0 = arith.constant 0 : index
    %c0_0 = arith.constant 0 : index
    %0 = vector.load %arg1[%c0, %c0_0] : memref<8x32xbf16, #tpu.memory_space<vmem>>, vector<8x32xbf16>
    %c0_1 = arith.constant 0 : index
    %c0_2 = arith.constant 0 : index
    %1 = vector.load %arg2[%c0_1, %c0_2] : memref<32x64xbf16, #tpu.memory_space<vmem>>, vector<32x64xbf16>
    %cst = arith.constant dense<0.000000e+00> : vector<8x64xf32>
    %2 = tpu.matmul %0, %1, %cst {dimension_numbers = #tpu.dot_dimension_numbers<[1], [0], [0], [1], [0, 0, 1, 1], [], []>} : vector<8x32xbf16>, vector<32x64xbf16>, vector<8x64xf32> -> vector<8x64xf32>
    %c0_3 = arith.constant 0 : index
    %c0_4 = arith.constant 0 : index
    %3 = vector.load %arg3[%c0_3, %c0_4] : memref<1x64xf32, #tpu.memory_space<vmem>>, vector<1x64xf32>
    %4 = vector.broadcast %3 : vector<1x64xf32> to vector<8x64xf32>
    %5 = arith.addf %2, %4 : vector<8x64xf32>
    %6 = math.tanh %5 : vector<8x64xf32>
    %7 = arith.truncf %6 : vector<8x64xf32> to vector<8x64xbf16>
    %c0_5 = arith.constant 0 : index
    %c0_6 = arith.constant 0 : index
    %8 = vector.load %arg4[%c0_5, %c0_6] : memref<64x10xbf16, #tpu.memory_space<vmem>>, vector<64x10xbf16>
    %cst_7 = arith.constant dense<0.000000e+00> : vector<8x10xf32>
    %9 = tpu.matmul %7, %8, %cst_7 {dimension_numbers = #tpu.dot_dimension_numbers<[1], [0], [0], [1], [0, 0, 1, 1], [], []>} : vector<8x64xbf16>, vector<64x10xbf16>, vector<8x10xf32> -> vector<8x10xf32>
    %c0_8 = arith.constant 0 : index
    %c0_9 = arith.constant 0 : index
    %10 = vector.load %arg5[%c0_8, %c0_9] : memref<1x10xf32, #tpu.memory_space<vmem>>, vector<1x10xf32>
    %11 = vector.broadcast %10 : vector<1x10xf32> to vector<8x10xf32>
    %12 = arith.addf %9, %11 : vector<8x10xf32>
    %13 = tpu.iota {dimensions = array<i32: 1>} : vector<8x10xi32>
    %14 = math.tanh %12 : vector<8x10xf32>
    %cst_10 = arith.constant 1.000000e+00 : f32
    %15 = vector.broadcast %cst_10 : f32 to vector<8x10xf32>
    %16 = arith.mulf %15, %14 : vector<8x10xf32>
    %cst_11 = arith.constant 0.000000e+00 : f32
    %17 = vector.broadcast %cst_11 : f32 to vector<8x10xf32>
    %18 = arith.subf %16, %17 : vector<8x10xf32>
    %cst_12 = arith.constant 0.000000e+00 : f32
    %19 = vector.broadcast %cst_12 : f32 to vector<8x10xf32>
    %20 = arith.maximumf %12, %19 : vector<8x10xf32>
    %21 = math.absf %12 : vector<8x10xf32>
    %cst_13 = arith.constant 0.000000e+00 : f32
    %22 = vector.broadcast %cst_13 : f32 to vector<8x10xf32>
    %23 = arith.subf %22, %21 : vector<8x10xf32>
    %24 = math.exp %23 : vector<8x10xf32>
    %25 = math.log1p %24 : vector<8x10xf32>
    %26 = arith.addf %20, %25 : vector<8x10xf32>
    %c5_i32 = arith.constant 5 : i32
    %27 = vector.broadcast %c5_i32 : i32 to vector<8x10xi32>
    %28 = arith.cmpi slt, %13, %27 : vector<8x10xi32>
    %29 = arith.select %28, %18, %26 : vector<8x10xi1>, vector<8x10xf32>
    %c0_14 = arith.constant 0 : index
    %c0_15 = arith.constant 0 : index
    %30 = vector.load %arg6[%c0_14, %c0_15] : memref<8x10xf32, #tpu.memory_space<vmem>>, vector<8x10xf32>
    tpu.vector_store %arg6[%c0_14, %c0_15], %29 {strides = array<i32>} : memref<8x10xf32, #tpu.memory_space<vmem>>, vector<8x10xf32>,
    return
  }
  func.func @transform_0(%arg0: i32) -> (i32, i32) {
    %c0_i32 = arith.constant 0 : i32
    %c0_i32_0 = arith.constant 0 : i32
    return %arg0, %c0_i32 : i32, i32
  }
  func.func @transform_1(%arg0: i32) -> (i32, i32) {
    %c0_i32 = arith.constant 0 : i32
    %c0_i32_0 = arith.constant 0 : i32
    %c0_i32_1 = arith.constant 0 : i32
    return %c0_i32, %c0_i32_0 : i32, i32
  }
  func.func @transform_2(%arg0: i32) -> (i32, i32) {
    %c0_i32 = arith.constant 0 : i32
    %c0_i32_0 = arith.constant 0 : i32
    %c0_i32_1 = arith.constant 0 : i32
    return %c0_i32, %c0_i32_0 : i32, i32
  }
  func.func @transform_3(%arg0: i32) -> (i32, i32) {
    %c0_i32 = arith.constant 0 : i32
    %c0_i32_0 = arith.constant 0 : i32
    %c0_i32_1 = arith.constant 0 : i32
    return %c0_i32, %c0_i32_0 : i32, i32
  }
  func.func @transform_4(%arg0: i32) -> (i32, i32) {
    %c0_i32 = arith.constant 0 : i32
    %c0_i32_0 = arith.constant 0 : i32
    %c0_i32_1 = arith.constant 0 : i32
    return %c0_i32, %c0_i32_0 : i32, i32
  }
  func.func @transform_5(%arg0: i32) -> (i32, i32) {
    %c0_i32 = arith.constant 0 : i32
    %c0_i32_0 = arith.constant 0 : i32
    return %arg0, %c0_i32 : i32, i32
  }
}

</mosaic_0001>

<bundles_post_ra>
// kernel: tpu_custom_call.1
= control target key start
LH: loop header
LB: loop body
LE: loop exit
PB: predicated region body
PF: predicated region fallthrough
CT: control target
= control target key end

     0   :  { %10 = vsyncpa [#allocation3], 0  ;;  %v46_v1 = vlaneseq  ;;  %v326_v2 = vmov 0.0   ;;  %vm327_vm0 = vmmov 0   ;;  %v328_v8 = vmov 1966171168   ;;  %s412_s0 = inlined_call_operand.vmem [shape: bf16[2,32], index: 0, kind: input, shape index: {}]   ;;  %s413_s1 = inlined_call_operand.vmem [shape: bf16[32,64], index: 1, kind: input, shape index: {}]   ;;  %s414_s2 = inlined_call_operand.vmem [shape: f32[1,64], index: 2, kind: input, shape index: {}]   ;;  %s415_s3 = inlined_call_operand.vmem [shape: bf16[64,10], index: 3, kind: input, shape index: {}]   ;;  %s416_s4 = inlined_call_operand.vmem [shape: f32[1,10], index: 4, kind: input, shape index: {}]   ;;  %s417_s5 = inlined_call_operand.hbm [shape: f32[2,10], index: 5, kind: output, shape index: {}]  }
   0x1   :  { %v288_v0 = vld [vmem:[%s413_s1] sm:$0xff]   ;;  %262 = vmatprep.subr.bf16.mxu0 %v326_v2  ;;  %270 = vmatprep.subr.bf16.mxu1 %v326_v2  ;;  %v289_v3 = vld [vmem:[%s413_s1 + $0x8] sm:$0xff]   ;;  %v44_v9 = vunpack.c.l.s4 %v328_v8  ;;  %vm77_vm1 = vcmask 261120   ;;  %v292_v21 = vld [vmem:[%s415_s3 + $0x10] sm:$0xff]   ;;  %vm162_vm2 = vcmask 523264   ;;  %vm226_vm5 = vcmask 80896  }
   0x2   :  { %263 = vmatpush3.bf16.msra.mxu0 %v288_v0  ;;  %v22_v4 = vld [vmem:[%s412_s0] sm:$0x1]  ;;  %v23_v5 = vld [vmem:[%s412_s0 + $0x1] sm:$0x1]  ;;  %266 = vmatprep.mubr.msk.bf16.mxu0 %vm327_vm0, %v326_v2  ;;  %v24_v6 = vld [vmem:[%s412_s0 + $0x2] sm:$0x1] }
   0x3   :  { %264 = vmatprep.subr.bf16.mxu0 %v326_v2  ;;  %v25_v7 = vld [vmem:[%s412_s0 + $0x3] sm:$0x1]  ;;  %v47_v10 = vshrl.u32 %v46_v1, 7  ;;  %278 = vmatprep.mubr.msk.bf16.mxu1 %vm327_vm0, %v326_v2  ;;  %v41_v11 = vcombine.low %v22_v4, %v23_v5  ;;  %v45_v13 = vunpack.c.0.s8 %v44_v9  ;;  %v291_v20 = vld [vmem:[%s415_s3 + $0x8] sm:$0xff]   ;;  %v293_v22 = vld [vmem:[%s415_s3 + $0x18] sm:$0xff]   ;;  %v207_v45 = vand.u32 127, %v46_v1 }
   0x4   :  { %v42_v12 = vcombine.low %v24_v6, %v25_v7  ;;  %v290_v19 = vld [vmem:[%s415_s3] sm:$0xff]  }
   0x5   :  { %v48_v14 = vsub.s32 %v45_v13, %v47_v10  ;;  %271 = vmatpush3.bf16.msra.mxu1 %v290_v19  ;;  %v244_v23 = vld [vmem:[%s414_s2] ss:$0 sm:$0xff]  ;;  %vm224_vm4 = vcmp.lt.s32.totalorder %v207_v45, 5 }
   0x6   :  { %265 = vmatpush3.bf16.msra.mxu0 %v289_v3  ;;  %272 = vmatprep.subr.bf16.mxu1 %v326_v2  ;;  %v248_v31 = vld [vmem:[%s416_s4] ss:$0 sm:$0xff] }
   0x7   :  { %v49_v15 = vrot.slane %v41_v11, %v48_v14  ;;  %v56_v16 = vrot.slane %v42_v12, %v48_v14 }
   0x9   :  { %v57_v17 = vcombine.low %v49_v15, %v56_v16  ;;  %273 = vmatpush3.bf16.msra.mxu1 %v291_v20 }
   0xa   :  { %274 = vmatprep.subr.bf16.mxu1 %v326_v2 }
   0xb   :  { %v64_v18 = vrot.slane %v57_v17, %v48_v14 }
   0xd   :  { %267 = vmatmul.mubr.msk.bf16.vlgmr.msra.gmra.mrb[0].mxu0 %vm77_vm1, %v64_v18  ;;  %275 = vmatpush3.bf16.msra.mxu1 %v292_v21 }
   0xe   :  { %276 = vmatprep.subr.bf16.mxu1 %v326_v2 }
  0x11   :  { %277 = vmatpush3.bf16.msra.mxu1 %v293_v22 }
  0xe0   :  { %v115_v24 = vpop.f32.mrb[0].mxu0 }
  0xe1   :  { %v116_v25 = vadd.f32 %v244_v23, %v115_v24  ;;  %v268_v26 = vpop.f32.mrb[1].mxu0 }
  0xe2   :  { %v118_v27 = vpop.f32.mrb[2].mxu0 }
  0xe3   :  { %294 = vtanh.f32 %v116_v25  ;;  %v269_v28 = vpop.f32.mrb[3].mxu0 }
  0xed   :  { %v295_v29 = vpop.eup %294 }
  0xee   :  { %v122_v30 = vpack.c.bf16 %v295_v29, %v295_v29 }
  0xf0   :  { %279 = vmatmul.mubr.msk.bf16.vlgmr.msra.gmra.mrb[0].mxu1 %vm162_vm2, %v122_v30 }
 0x1c3   :  { %v200_v32 = vpop.f32.mrb[0].mxu1 }
 0x1c4   :  { %v201_v33 = vadd.f32 %v248_v31, %v200_v32  ;;  %v280_v34 = vpop.f32.mrb[1].mxu1 }
 0x1c5   :  { %v203_v35 = vpop.f32.mrb[2].mxu1 }
 0x1c6   :  { %v210_v36 = vand.u32 2147483647, %v201_v33  ;;  %v281_v37 = vpop.f32.mrb[3].mxu1  ;;  %v209_v49 = vmax.f32 %v201_v33, 0.0 }
 0x1c8   :  { %v211_v38 = vsub.f32 0.0, %v210_v36 }
 0x1ca   :  { %v212_v39 = vmul.f32 1.442695, %v211_v38 }
 0x1cc   :  { %296 = vpow2.f32 %v212_v39 }
 0x1d6   :  { %v297_v40 = vpop.eup %296 }
 0x1d7   :  { %v214_v41 = vadd.f32 1.0, %v297_v40  ;;  %v217_v42 = vmul.f32 -0.5, %v297_v40  ;;  %v220_v44 = vand.u32 2147483647, %v297_v40 }
 0x1d9   :  { %298 = vlog2.f32 %v214_v41  ;;  %v218_v43 = vadd.f32 1.0, %v217_v42  ;;  %vm221_vm3 = vcmp.lt.f32.partialorder %v220_v44, 0.0004427343 }
 0x1da   :  { %300 = vtanh.f32 %v201_v33 }
 0x1db   :  { %v219_v48 = vmul.f32 %v297_v40, %v218_v43 }
 0x1e3   :  { %v299_v46 = vpop.eup %298 }
 0x1e4   :  { %v216_v47 = vmul.f32 0.6931472, %v299_v46  ;;  %v301_v52 = vpop.eup %300 }
 0x1e6   :  { %v222_v50 = vsel %vm221_vm3, %v219_v48, %v216_v47 }
 0x1e7   :  { %v223_v51 = vadd.f32 %v222_v50, %v209_v49 }
 0x1e9   :  { %v225_v53 = vsel %vm224_vm4, %v301_v52, %v223_v51 }
 0x1ea   :  { %227 = vst.msk [vmem:[#allocation2] sm:$0xff] %vm226_vm5, %v225_v53 }
 0x1eb   :  { %232 = vsyncadd [#allocation3], 96  ;;  %s329_s2 = smov [#allocation2]  }
 0x1ec   :  { %s233_s3 = sshll.u32 %s329_s2, 4  ;;  %s234_s3 = int_to_ptr.vmem [resolvable:$true] %s233_s3 }
 0x1ed   :  { %s302_s4 = scalar_lea.vmem %s234_s3, 32  ;;  %s306_s15 = scalar_lea.vmem %s234_s3, 128 }
 0x1ee   :  { %p303_p0 = scmp.ne.s32.totalorder %s234_s3, %s302_s4  ;;  %p307_p1 = scmp.lt.s32.totalorder %s234_s3, %s234_s3 }
 0x1ef   :  { %p308_p2 = scmp.lt.s32.totalorder %s306_s15, %s302_s4 }
 0x1f1   :  { %p309_p3 = por %p308_p2, %p307_p1 }
 0x1f3   :  { %p310_p4 = pnand %p309_p3, %p303_p0 }
 0x1f5   :  { %313 = shalt.err (!%p310_p4)
}
 0x1f6   :  { %s314_s18 = scalar_lea.hbm %s417_s5, 32 }
 0x1f7   :  { %p315_p5 = scmp.ne.s32.totalorder %s417_s5, %s314_s18  ;;  %p318_p6 = scmp.lt.u32.totalorder %s314_s18, %s417_s5 }
 0x1f9   :  { %p320_p7 = pnand %p318_p6, %p315_p5 }
 0x1fb   :  { %323 = shalt.err (!%p320_p7)
}
 0x1fc   :  { %s330_s23 = smov 32   ;;  %s331_s24 = smov 2  }
 0x1fd   :  { %239 = dma.vmem_to_hbm [thread:$0]  %s234_s3, 32, %s417_s5, [#allocation3], %s330_s23, %s330_s23, %s331_s24  }
 0x1fe   :  { %324 = dma.done.wait [#allocation3], 128  }
 0x1ff   :  { %325 = vsyncadd [#allocation3], 4294967168 }
 0x200   :  { %243 = vsyncpa [#allocation3], 1 }

</bundles_post_ra>
